<compile_context>
chip_gen: v7x
topology: tpu7x:2x2x1
jax: 0.10.0
libtpu: 0.0.40
codegen_flags: <defaults>
</compile_context>

<pallas_src>
import jax
import jax.numpy as jnp
from jax.experimental import pallas as pl
from jax.experimental.pallas import tpu as pltpu


# ----------------------------- Pallas kernel -----------------------------

def patchify_kernel(x_ref, w_ref, pb_ref, o_ref):
    # x_ref : (TILE_M, K_pad)   bf16 visible-patch pixels (one patch per row)
    # w_ref : (K_pad, E_pad)    bf16 patch-embedding weight, VMEM-resident
    # pb_ref: (TILE_M, E_pad)   bf16 per-row (positional embedding + conv bias)
    # o_ref : (TILE_M, E_pad)   output tokens (f32 by default)
    acc = jnp.dot(x_ref[...], w_ref[...], preferred_element_type=jnp.float32)
    o_ref[...] = (acc + pb_ref[...].astype(jnp.float32)).astype(o_ref.dtype)


def _round_up(x, m):
    return ((x + m - 1) // m) * m


def _cdiv(a, b):
    return -(-a // b)


def _vmem_budget_bytes():
    """One budget for the tile-shrink loop AND vmem_limit_bytes, ~25% headroom."""
    cap = 128 * 1024 * 1024
    try:
        info = pltpu.get_tpu_info()
        cap = int(getattr(info, "vmem_capacity_bytes", cap))
    except Exception:
        pass
    # v7x (64 MiB)  -> 48 MiB ;  v5e/v6e (128 MiB) -> 96 MiB (capped at 100 MiB)
    return min((cap * 3) // 4, 100 * 1024 * 1024)


def patch_embed_pallas(x_rows, w_mat, pb_rows, *, tile_m=1024,
                       out_dtype=jnp.float32):
    """out[r] = x_rows[r] @ w_mat + pb_rows[r]   (f32 accumulate on the MXU)."""
    M, K = x_rows.shape
    E = w_mat.shape[1]
    E_pad = _round_up(E, 128)          # lane-dense output stores
    K_pad = _round_up(K, 128)          # lane-dense X tiles / full MXU K passes
    out_itemsize = jnp.dtype(out_dtype).itemsize

    budget = _vmem_budget_bytes()

    # Tile size: big enough to feed the pipeline, clamped to the (padded)
    # problem size, multiple of 16 for bf16 sublane packing.
    tile_m = max(16, _round_up(min(tile_m, _round_up(M, 16)), 16))

    def vmem_bytes(tm):
        x_b = 2 * tm * K_pad * 2                 # double-buffered bf16 X tiles
        pb_b = 2 * tm * E_pad * 2                # double-buffered bf16 pos+bias
        out_b = 2 * tm * E_pad * out_itemsize    # double-buffered output tiles
        w_b = K_pad * E_pad * 2                  # resident (single-buffer) weight
        return x_b + pb_b + out_b + w_b

    while tile_m > 16 and vmem_bytes(tile_m) > budget:
        tile_m = max(16, _round_up(tile_m // 2, 16))

    # Ensure >= 2 grid steps where possible so megacore chips (v7x) split the
    # "parallel" axis across both TensorCores; one extra ~0.35 us step is
    # negligible on single-core chips.
    if M > 16 and _round_up(M, tile_m) // tile_m < 2:
        tile_m = max(16, _round_up(_cdiv(M, 2), 16))

    M_pad = _round_up(M, tile_m)
    pad_m, pad_e, pad_k = M_pad - M, E_pad - E, K_pad - K
    if pad_m or pad_k:
        x_rows = jnp.pad(x_rows, ((0, pad_m), (0, pad_k)))
    if pad_m or pad_e:
        pb_rows = jnp.pad(pb_rows, ((0, pad_m), (0, pad_e)))
    if pad_k or pad_e:
        w_mat = jnp.pad(w_mat, ((0, pad_k), (0, pad_e)))

    grid = (M_pad // tile_m,)
    cost = pl.CostEstimate(
        flops=2 * M_pad * K_pad * E_pad,
        transcendentals=0,
        bytes_accessed=(2 * M_pad * K_pad            # bf16 X
                        + 2 * M_pad * E_pad          # bf16 pos+bias
                        + out_itemsize * M_pad * E_pad
                        + 2 * K_pad * E_pad),        # bf16 W
    )

    def run(w_spec):
        return pl.pallas_call(
            patchify_kernel,
            out_shape=jax.ShapeDtypeStruct((M_pad, E_pad), out_dtype),
            grid_spec=pltpu.PrefetchScalarGridSpec(
                num_scalar_prefetch=0,
                grid=grid,
                in_specs=[
                    pl.BlockSpec((tile_m, K_pad), lambda i: (i, 0)),
                    w_spec,                                   # constant -> resident
                    pl.BlockSpec((tile_m, E_pad), lambda i: (i, 0)),
                ],
                out_specs=pl.BlockSpec((tile_m, E_pad), lambda i: (i, 0)),
            ),
            compiler_params=pltpu.CompilerParams(
                dimension_semantics=("parallel",),
                vmem_limit_bytes=int(budget),
            ),
            cost_estimate=cost,
        )(x_rows, w_mat, pb_rows)

    try:
        # Constant-index weight block does not need double buffering.
        out = run(pl.BlockSpec((K_pad, E_pad), lambda i: (0, 0),
                               pipeline_mode=pl.Buffered(1)))
    except Exception:
        # Fallback for jax versions / lowerings that reject Buffered(1) here.
        out = run(pl.BlockSpec((K_pad, E_pad), lambda i: (0, 0)))

    if pad_m or pad_e:
        out = out[:M, :E]
    return out


# ----------------------------- Patchify module -----------------------------

class PatchifyJax:
    """2D Patchify: masked patch-embedding conv + positional embedding.

    Matches cyto_dl Patchify forward semantics (spatial_dims=2,
    context_pixels=[0,0], tasks=[], learnable_pos_embedding=True).
    """

    def __init__(self, patch_size, emb_dim, n_patches, input_channels, key):
        self.patch_size = tuple(patch_size)       # (py, px)
        self.n_patches = tuple(n_patches)         # (n_py, n_px)
        self.emb_dim = emb_dim
        self.input_channels = input_channels
        self.num_patches = n_patches[0] * n_patches[1]

        k_w, k_b, k_pos = jax.random.split(key, 3)
        C, py, px, E = input_channels, patch_size[0], patch_size[1], emb_dim
        fan_in = C * py * px
        # Conv2d weight (E, C, py, px), bias (E,) — deterministic init.
        self.conv_w = (jax.random.normal(k_w, (E, C, py, px), jnp.float32)
                       / jnp.sqrt(fan_in))
        self.conv_b = jax.random.normal(k_b, (E,), jnp.float32) * 0.02
        # Learnable positional embedding (num_patches, 1, E).
        self.pos_embedding = (jax.random.normal(
            k_pos, (self.num_patches, 1, E), jnp.float32) * 0.02)

    def get_mask(self, img, n_visible_patches, key):
        B = img.shape[0]
        N = self.num_patches
        n_py, n_px = self.n_patches
        py, px = self.patch_size

        keys = jax.random.split(key, B)
        forward_indexes = jnp.stack(
            [jax.random.permutation(k, N) for k in keys], axis=-1)      # (N, B)
        backward_indexes = jnp.argsort(forward_indexes, axis=0)         # (N, B)

        mask_seq = jnp.broadcast_to(
            (jnp.arange(N) < n_visible_patches)[:, None, None], (N, B, 1))
        mask_tok = jnp.take_along_axis(mask_seq, backward_indexes[..., None],
                                       axis=0)                          # (N, B, 1)

        # patch2img: (N, B, 1) -> (B, 1, n_py, n_px) -> repeat to pixels
        m = mask_tok.reshape(n_py, n_px, B, 1)
        m = jnp.transpose(m, (2, 3, 0, 1))                              # (B,1,n_py,n_px)
        mask_img = jnp.repeat(jnp.repeat(m, py, axis=2), px, axis=3)    # (B,1,H,W)
        return mask_img, forward_indexes, backward_indexes

    def forward(self, img, mask_ratio, key, task=None):
        # TODO(synk): task_embedding dict is empty (tasks=[]); task branch not exercised.
        B, C, H, W = img.shape
        py, px = self.patch_size
        n_py, n_px = self.n_patches
        N, E = self.num_patches, self.emb_dim
        K = C * py * px

        n_visible = int(N * (1 - mask_ratio))
        mask_img, fwd, bwd = self.get_mask(img, n_visible, key)

        # --- glue: rearrange image into patch rows, '(y x) b' patch-major ---
        x = img.reshape(B, C, n_py, py, n_px, px)
        x = jnp.transpose(x, (2, 4, 0, 1, 3, 5))          # (n_py, n_px, B, C, py, px)
        # bf16 BEFORE the gather so the gathered intermediate is 2 B/elem.
        x_patches = x.reshape(N, B, K).astype(jnp.bfloat16)

        # Fold conv bias into the positional-embedding table once; bf16 stream.
        pos_bias = (self.pos_embedding.reshape(N, E)
                    + self.conv_b[None, :]).astype(jnp.bfloat16)

        if mask_ratio > 0:
            # Only visible tokens are ever returned, and the mask is identically
            # 1 over every visible patch (context_pixels == 0), so the masked
            # conv reduces to a plain patch matmul on the gathered visible rows.
            fwd_vis = fwd[:n_visible]                                        # (n_vis, B)
            x_sel = jnp.take_along_axis(x_patches, fwd_vis[..., None], axis=0)
            pb_sel = pos_bias[fwd_vis]                                       # (n_vis, B, E)
            n_rows_tok = n_visible
        else:
            x_sel = x_patches
            pb_sel = jnp.broadcast_to(pos_bias[:, None, :], (N, B, E))
            n_rows_tok = N

        M = n_rows_tok * B
        x_rows = x_sel.reshape(M, K)                              # bf16 MXU inputs
        pb_rows = pb_sel.reshape(M, E)                            # bf16 pos+bias
        w_mat = self.conv_w.reshape(E, K).T.astype(jnp.bfloat16)  # (K, E)

        # --- Pallas hot path: X @ W + (pos + bias), f32 accumulate ---
        # out_dtype=jnp.bfloat16 would halve the output stream if the MAE
        # encoder consumes bf16; f32 kept to match the PyTorch module.
        out_rows = patch_embed_pallas(x_rows, w_mat, pb_rows, tile_m=1024,
                                      out_dtype=jnp.float32)
        tokens = out_rows.reshape(n_rows_tok, B, E)               # '(y x) b c' layout

        return tokens, ~mask_img, fwd, bwd


# ----------------------------- demo / check -----------------------------

if __name__ == "__main__":
    key = jax.random.PRNGKey(0)
    k_param, k_img, k_mask = jax.random.split(key, 3)

    B, C = 2, 4
    patch_size = (4, 4)
    n_patches = (4, 4)
    emb_dim = 32
    H = patch_size[0] * n_patches[0]
    W = patch_size[1] * n_patches[1]

    module = PatchifyJax(patch_size, emb_dim, n_patches, C, k_param)
    img = jax.random.normal(k_img, (B, C, H, W), jnp.float32)   # NCHW

    mask_ratio = 0.25
    tokens, neg_mask, fwd, bwd = module.forward(img, mask_ratio, k_mask)
    tokens = jax.block_until_ready(tokens)

    # Pure-JAX f32 reference on the SAME bf16-quantized operands (patches,
    # weights, folded pos+bias), so the deliberate bf16 casts do not require
    # loose tolerances.
    N = n_patches[0] * n_patches[1]
    n_visible = int(N * (1 - mask_ratio))
    mask_img = ~neg_mask
    masked = img * mask_img.astype(img.dtype)
    patches = masked.reshape(B, C, n_patches[0], patch_size[0],
                             n_patches[1], patch_size[1])
    patches_q = patches.astype(jnp.bfloat16).astype(jnp.float32)
    w_q = module.conv_w.astype(jnp.bfloat16).astype(jnp.float32)
    ref = jnp.einsum('bcypxq,ecpq->beyx', patches_q, w_q,
                     precision=jax.lax.Precision.HIGHEST,
                     preferred_element_type=jnp.float32)
    ref_tok = jnp.transpose(ref, (2, 3, 0, 1)).reshape(N, B, emb_dim)
    pb_q = (module.pos_embedding.reshape(N, emb_dim)
            + module.conv_b[None, :]).astype(jnp.bfloat16).astype(jnp.float32)
    ref_tok = ref_tok + pb_q[:, None, :]
    ref_tok = jnp.take_along_axis(ref_tok, fwd[..., None], axis=0)[:n_visible]

    assert tokens.shape == (n_visible, B, emb_dim)
    assert neg_mask.shape == (B, 1, H, W) and neg_mask.dtype == jnp.bool_
    assert fwd.shape == (N, B) and bwd.shape == (N, B)
    assert jnp.allclose(tokens, ref_tok, atol=1e-3, rtol=1e-3)

    print("KERNEL_OK")
</pallas_src>

<mosaic_0001>
module attributes {stable_mosaic.version = 11 : i64} {
  func.func @patchify_kernel(%arg0: i32, %arg1: memref<16x128xbf16, #tpu.memory_space<vmem>>, %arg2: memref<128x128xbf16, #tpu.memory_space<vmem>>, %arg3: memref<16x128xbf16, #tpu.memory_space<vmem>>, %arg4: memref<16x128xf32, #tpu.memory_space<vmem>>) attributes {dimension_semantics = [#tpu.dimension_semantics<parallel>], iteration_bounds = array<i64: 2>, scalar_prefetch = 0 : i64, scratch_operands = 0 : i64, tpu.core_type = #tpu.core_type<tc>, window_params = [{transform_indices = @transform_0, window_bounds = array<i64: 16, 128>}, {pipeline_mode = #tpu.pipeline_mode<synchronous>, transform_indices = @transform_1, window_bounds = array<i64: 128, 128>}, {transform_indices = @transform_2, window_bounds = array<i64: 16, 128>}, {transform_indices = @transform_3, window_bounds = array<i64: 16, 128>}]} {
    %c0 = arith.constant 0 : index
    %c0_0 = arith.constant 0 : index
    %0 = vector.load %arg1[%c0, %c0_0] : memref<16x128xbf16, #tpu.memory_space<vmem>>, vector<16x128xbf16>
    %c0_1 = arith.constant 0 : index
    %c0_2 = arith.constant 0 : index
    %1 = vector.load %arg2[%c0_1, %c0_2] : memref<128x128xbf16, #tpu.memory_space<vmem>>, vector<128x128xbf16>
    %cst = arith.constant dense<0.000000e+00> : vector<16x128xf32>
    %2 = tpu.matmul %0, %1, %cst {dimension_numbers = #tpu.dot_dimension_numbers<[1], [0], [0], [1], [0, 0, 1, 1], [], []>} : vector<16x128xbf16>, vector<128x128xbf16>, vector<16x128xf32> -> vector<16x128xf32>
    %c0_3 = arith.constant 0 : index
    %c0_4 = arith.constant 0 : index
    %3 = vector.load %arg3[%c0_3, %c0_4] : memref<16x128xbf16, #tpu.memory_space<vmem>>, vector<16x128xbf16>
    %4 = arith.extf %3 : vector<16x128xbf16> to vector<16x128xf32>
    %5 = arith.addf %2, %4 : vector<16x128xf32>
    %c0_5 = arith.constant 0 : index
    %c0_6 = arith.constant 0 : index
    %6 = vector.load %arg4[%c0_5, %c0_6] : memref<16x128xf32, #tpu.memory_space<vmem>>, vector<16x128xf32>
    tpu.vector_store %arg4[%c0_5, %c0_6], %5 {strides = array<i32>} : memref<16x128xf32, #tpu.memory_space<vmem>>, vector<16x128xf32>,
    return
  }
  func.func @transform_0(%arg0: i32) -> (i32, i32) {
    %c0_i32 = arith.constant 0 : i32
    %c0_i32_0 = arith.constant 0 : i32
    return %arg0, %c0_i32 : i32, i32
  }
  func.func @transform_1(%arg0: i32) -> (i32, i32) {
    %c0_i32 = arith.constant 0 : i32
    %c0_i32_0 = arith.constant 0 : i32
    %c0_i32_1 = arith.constant 0 : i32
    return %c0_i32, %c0_i32_0 : i32, i32
  }
  func.func @transform_2(%arg0: i32) -> (i32, i32) {
    %c0_i32 = arith.constant 0 : i32
    %c0_i32_0 = arith.constant 0 : i32
    return %arg0, %c0_i32 : i32, i32
  }
  func.func @transform_3(%arg0: i32) -> (i32, i32) {
    %c0_i32 = arith.constant 0 : i32
    %c0_i32_0 = arith.constant 0 : i32
    return %arg0, %c0_i32 : i32, i32
  }
}

module attributes {stable_mosaic.version = 11 : i64} {
  func.func @patchify_kernel(%arg0: i32, %arg1: memref<16x128xbf16, #tpu.memory_space<vmem>>, %arg2: memref<128x128xbf16, #tpu.memory_space<vmem>>, %arg3: memref<16x128xbf16, #tpu.memory_space<vmem>>, %arg4: memref<16x128xf32, #tpu.memory_space<vmem>>) attributes {dimension_semantics = [#tpu.dimension_semantics<parallel>], iteration_bounds = array<i64: 2>, scalar_prefetch = 0 : i64, scratch_operands = 0 : i64, tpu.core_type = #tpu.core_type<tc>, window_params = [{transform_indices = @transform_0, window_bounds = array<i64: 16, 128>}, {pipeline_mode = #tpu.pipeline_mode<synchronous>, transform_indices = @transform_1, window_bounds = array<i64: 128, 128>}, {transform_indices = @transform_2, window_bounds = array<i64: 16, 128>}, {transform_indices = @transform_3, window_bounds = array<i64: 16, 128>}]} {
    %c0 = arith.constant 0 : index
    %c0_0 = arith.constant 0 : index
    %0 = vector.load %arg1[%c0, %c0_0] : memref<16x128xbf16, #tpu.memory_space<vmem>>, vector<16x128xbf16>
    %c0_1 = arith.constant 0 : index
    %c0_2 = arith.constant 0 : index
    %1 = vector.load %arg2[%c0_1, %c0_2] : memref<128x128xbf16, #tpu.memory_space<vmem>>, vector<128x128xbf16>
    %cst = arith.constant dense<0.000000e+00> : vector<16x128xf32>
    %2 = tpu.matmul %0, %1, %cst {dimension_numbers = #tpu.dot_dimension_numbers<[1], [0], [0], [1], [0, 0, 1, 1], [], []>} : vector<16x128xbf16>, vector<128x128xbf16>, vector<16x128xf32> -> vector<16x128xf32>
    %c0_3 = arith.constant 0 : index
    %c0_4 = arith.constant 0 : index
    %3 = vector.load %arg3[%c0_3, %c0_4] : memref<16x128xbf16, #tpu.memory_space<vmem>>, vector<16x128xbf16>
    %4 = arith.extf %3 : vector<16x128xbf16> to vector<16x128xf32>
    %5 = arith.addf %2, %4 : vector<16x128xf32>
    %c0_5 = arith.constant 0 : index
    %c0_6 = arith.constant 0 : index
    %6 = vector.load %arg4[%c0_5, %c0_6] : memref<16x128xf32, #tpu.memory_space<vmem>>, vector<16x128xf32>
    tpu.vector_store %arg4[%c0_5, %c0_6], %5 {strides = array<i32>} : memref<16x128xf32, #tpu.memory_space<vmem>>, vector<16x128xf32>,
    return
  }
  func.func @transform_0(%arg0: i32) -> (i32, i32) {
    %c0_i32 = arith.constant 0 : i32
    %c0_i32_0 = arith.constant 0 : i32
    return %arg0, %c0_i32 : i32, i32
  }
  func.func @transform_1(%arg0: i32) -> (i32, i32) {
    %c0_i32 = arith.constant 0 : i32
    %c0_i32_0 = arith.constant 0 : i32
    %c0_i32_1 = arith.constant 0 : i32
    return %c0_i32, %c0_i32_0 : i32, i32
  }
  func.func @transform_2(%arg0: i32) -> (i32, i32) {
    %c0_i32 = arith.constant 0 : i32
    %c0_i32_0 = arith.constant 0 : i32
    return %arg0, %c0_i32 : i32, i32
  }
  func.func @transform_3(%arg0: i32) -> (i32, i32) {
    %c0_i32 = arith.constant 0 : i32
    %c0_i32_0 = arith.constant 0 : i32
    return %arg0, %c0_i32 : i32, i32
  }
}

</mosaic_0001>

<bundles_post_ra>
// kernel: tpu_custom_call.1
= control target key start
LH: loop header
LB: loop body
LE: loop exit
PB: predicated region body
PF: predicated region fallthrough
CT: control target
= control target key end

     0   :  { %8 = vsyncpa [#allocation3], 0  ;;  %s1081_s0 = inlined_call_operand.hbm [shape: bf16[32,128], index: 0, kind: input, shape index: {}]   ;;  %s1082_s1 = inlined_call_operand.hbm [shape: bf16[128,128], index: 1, kind: input, shape index: {}]   ;;  %s1083_s2 = inlined_call_operand.hbm [shape: bf16[32,128], index: 2, kind: input, shape index: {}]   ;;  %s1084_s3 = inlined_call_operand.hbm [shape: f32[32,128], index: 3, kind: output, shape index: {}]  }
   0x1   :  { %10 = vsyncpa [#allocation3 + $0x1], 0 }
   0x2   :  { %11 = vsyncpa [#allocation6], 0 }
   0x3   :  { %12 = vsyncpa [#allocation4], 0 }
   0x4   :  { %14 = vsyncpa [#allocation4 + $0x1], 0  ;;  %s817_s12 = smov 0   ;;  %s819_s13 = smov 0  }
   0x5   :  { %s821_s14 = smov 0   ;;  %s823_s15 = smov 0  }
   0x6 LB: > { %s838_s16 = sadd.s32 1, %s785_s15   ;;  %s27_s17 = sadd.s32 1, %s781_s14  ;;  %s785_s15 = sphi %s823_s15, %s1107_s15   ;;  %s781_s14 = sphi %s821_s14, %s1106_s14   ;;  %s777_s13 = sphi %s819_s13, %s1105_s13   ;;  %s773_s12 = sphi %s817_s12, %s1104_s12  }
   0x7   : > { %s24_s18 = ssub.s32 %s785_s15, %s838_s16  ;;  %p34_p0 = scmp.ne.s32.totalorder %s781_s14, %s777_s13 }
   0x8   : > { %p25_p1 = scmp.eq.s32.totalorder %s24_s18, 0  ;;  %p35_p2 = scmp.eq.s32.totalorder %s785_s15, 0 }
   0x9   : > { %p572_p5 = scmp.lt.s32.totalorder %s785_s15, 2  ;;  %s150_s20 = sand.u32 1, %s785_s15  }
   0xa   : > { %s847_s19 = scalar_select %p25_p1, %s781_s14, %s27_s17  }
   0xb   : > { %p36_p3 = por %p35_p2, %p34_p0  ;;  %s152_s21 = sand.u32 1, %s781_s14  }
   0xc   : > { %s856_s22 = sshll.u32 %s152_s21, 3  ;;  %s510_s23 = sshll.u32 %s785_s15, 7 }
   0xd   : > { %s864_s26 = scalar_lea.hbm %s1081_s0, %s510_s23  ;;  %s154_s27 = scalar_lea.vmem [#allocation2], %s856_s22 }
   0xe   : > { %s161_s28 = sshll.u32 %s154_s27, 4  ;;  %p867_p6 = pnand %p572_p5, %p36_p3  ;;  %s871_s28 = int_to_ptr.vmem [resolvable:$true] %s161_s28 }
   0xf   : > { %s873_s30 = scalar_lea.sflag [#allocation3], %s150_s20  ;;  %s623_s4 = scalar_lea.hbm %s864_s26, 128 }
  0x10   : > { %p624_p7 = scmp.ne.s32.totalorder %s864_s26, %s623_s4  ;;  %p625_p8 = pneg %p867_p6 }
  0x11   : > { %s628_s7 = scalar_lea.hbm %s1081_s0, 256  ;;  %p629_p11 = scmp.lt.u32.totalorder %s864_s26, %s1081_s0 }
  0x12   : > { %p626_p9 = pnand %p625_p8, %p624_p7  ;;  %p630_p12 = scmp.lt.u32.totalorder %s628_s7, %s623_s4 }
  0x13   : > { %p632_p1 = scmp.lt.u32.totalorder %s623_s4, %s864_s26 }
  0x14   : > { %p627_p10 = pneg %p626_p9  ;;  %p631_p13 = por %p630_p12, %p629_p11 }
  0x16   : > { %p633_p2 = por %p632_p1, %p631_p13 }
  0x18   : > { %p634_p3 = pnand %p633_p2, %p627_p10 }
  0x1a   : > { %637 = shalt.err (!%p634_p3)
}
  0x1b   : > { %s638_s10 = scalar_lea.vmem %s871_s28, 128  ;;  %s787_s11 = smov [#allocation2]  }
  0x1c   : > { %p639_p5 = scmp.ne.s32.totalorder %s871_s28, %s638_s10  ;;  %s643_s17 = sshll.u32 %s787_s11, 4  ;;  %s644_s17 = int_to_ptr.vmem [resolvable:$false] %s643_s17 }
  0x1d   : > { %s645_s18 = scalar_lea.vmem %s644_s17, 256  ;;  %p646_p4 = scmp.lt.s32.totalorder %s871_s28, %s644_s17 }
  0x1e   : > { %p641_p7 = pnand %p639_p5, %p625_p8  ;;  %p647_p11 = scmp.lt.s32.totalorder %s645_s18, %s638_s10 }
  0x20   : > { %p642_p9 = pneg %p641_p7  ;;  %p648_p12 = por %p647_p11, %p646_p4 }
  0x22   : > { %p649_p13 = pnand %p648_p12, %p642_p9 }
  0x24   : > { %652 = shalt.err (!%p649_p13)
}
  0x25   : > { %s788_s20 = smov 64   ;;  %s789_s21 = smov 4  }
  0x26   : > { %563 = dma.hbm_to_vmem [thread:$0]  (!%p867_p6), %s864_s26, 128, %s871_s28, %s873_s30, %s788_s20, %s788_s20, %s789_s21  }
  0x27   : > { %s175_s24 = scalar_lea.vmem [#allocation7], %s856_s22  ;;  %s906_s27 = sadd.s32 4294967295, %s785_s15  }
  0x28   : > { %s182_s25 = sshll.u32 %s175_s24, 4  ;;  %s481_s4 = sadd.s32 4294967294, %s785_s15   ;;  %s939_s25 = int_to_ptr.vmem [resolvable:$true] %s182_s25 }
  0x29   : > { %p40_p4 = scmp.ne.s32.totalorder %s777_s13, %s773_s12  ;;  %p1085_p10 = scmp.eq.s32.totalorder %s906_s27, 0 }
  0x2a   : > { %p111_p1 = scmp.eq.s32.totalorder %s906_s27, 1  ;;  %p117_p2 = scmp.eq.s32.totalorder %s481_s4, 1 }
  0x2b   : > { %p915_p3 = por %p1085_p10, %p40_p4  ;;  %p482_p5 = scmp.ge.s32.totalorder %s785_s15, 1 }
  0x2c   : > { %p923_p7 = por %p111_p1, %p34_p0  ;;  %p927_p9 = por %p117_p2, %p40_p4 }
  0x2d   : > { %s1090_s5 = scalar_select %p915_p3, 1, 0 }
  0x2e   : > { %s1091_s22 = scalar_select %p923_p7, 1, 0 }
  0x2f   : > { %s1092_s26 = scalar_select %p927_p9, 1, 0 }
  0x30   : > { %p124_p11 = scmp.lt.s32.totalorder %s785_s15, 3  ;;  %s937_s7 = scalar_lea.hbm %s1083_s2, %s510_s23 }
  0x31   : > { %s790_s9 = smov [#allocation5]   ;;  %s653_s11 = scalar_lea.hbm %s937_s7, 128 }
  0x32   : > { %p941_p0 = pnand %p482_p5, %p124_p11  ;;  %s945_s10 = sshll.u32 %s790_s9, 4  ;;  %s137_s10 = int_to_ptr.vmem [resolvable:$true] %s945_s10 }
  0x33   : > { %p654_p13 = scmp.ne.s32.totalorder %s937_s7, %s653_s11  ;;  %s658_s18 = scalar_lea.hbm %s1083_s2, 256 }
  0x34   : > { %s1093_s8 = scalar_select %p941_p0, 1, 0 }
  0x35   : > { %p656_p4 = pnand %p654_p13, %p625_p8  ;;  %p659_p2 = scmp.lt.u32.totalorder %s937_s7, %s1083_s2 }
  0x36   : > { %p660_p5 = scmp.lt.u32.totalorder %s658_s18, %s653_s11  ;;  %p662_p10 = scmp.lt.u32.totalorder %s653_s11, %s937_s7 }
  0x37   : > { %p657_p1 = pneg %p656_p4 }
  0x38   : > { %p661_p11 = por %p660_p5, %p659_p2 }
  0x3a   : > { %p663_p9 = por %p662_p10, %p661_p11 }
  0x3c   : > { %p664_p7 = pnand %p663_p9, %p657_p1 }
  0x3e   : > { %667 = shalt.err (!%p664_p7)
}
  0x3f   : > { %s668_s28 = scalar_lea.vmem %s939_s25, 128  ;;  %s791_s6 = smov [#allocation7]  }
  0x40   : > { %p669_p13 = scmp.ne.s32.totalorder %s939_s25, %s668_s28  ;;  %s673_s9 = sshll.u32 %s791_s6, 4  ;;  %s674_s9 = int_to_ptr.vmem [resolvable:$false] %s673_s9 }
  0x41   : > { %s675_s23 = scalar_lea.vmem %s674_s9, 256  ;;  %p676_p3 = scmp.lt.s32.totalorder %s939_s25, %s674_s9 }
  0x42   : > { %p671_p4 = pnand %p669_p13, %p625_p8  ;;  %p677_p2 = scmp.lt.s32.totalorder %s675_s23, %s668_s28 }
  0x44   : > { %p672_p12 = pneg %p671_p4  ;;  %p678_p5 = por %p677_p2, %p676_p3 }
  0x46   : > { %p679_p10 = pnand %p678_p5, %p672_p12 }
  0x48   : > { %682 = shalt.err (!%p679_p10)
}
  0x49   : > { %566 = dma.hbm_to_vmem [thread:$0]  (!%p867_p6), %s937_s7, 128, %s939_s25, %s873_s30, %s788_s20, %s788_s20, %s789_s21  }
  0x4a   : > { %p1094_p8 = scmp.eq.s32.totalorder %s906_s27, 0  ;;  %p1095_p7 = pneg %p941_p0 }
  0x4b   : > { %s683_s18 = scalar_lea.hbm %s1082_s1, 1024 }
  0x4c   : > { %p982_p9 = pnand %p1095_p7, %p1094_p8  ;;  %p684_p3 = scmp.ne.s32.totalorder %s1082_s1, %s683_s18 }
  0x4d   : > { %p690_p11 = scmp.lt.u32.totalorder %s683_s18, %s1082_s1 }
  0x4e   : > { %p685_p12 = pneg %p982_p9 }
  0x50   : > { %p686_p6 = pnand %p685_p12, %p684_p3 }
  0x52   : > { %p687_p1 = pneg %p686_p6 }
  0x54   : > { %p692_p13 = pnand %p690_p11, %p687_p1 }
  0x56   : > { %695 = shalt.err (!%p692_p13)
}
  0x57   : > { %s696_s7 = scalar_lea.vmem %s137_s10, 1024  ;;  %p704_p10 = scmp.lt.s32.totalorder %s137_s10, %s137_s10 }
  0x58   : > { %p697_p4 = scmp.ne.s32.totalorder %s137_s10, %s696_s7  ;;  %p705_p8 = scmp.lt.s32.totalorder %s696_s7, %s696_s7 }
  0x5a   : > { %p699_p2 = pnand %p697_p4, %p685_p12  ;;  %p706_p7 = por %p705_p8, %p704_p10 }
  0x5c   : > { %p700_p5 = pneg %p699_p2 }
  0x5e   : > { %p707_p0 = pnand %p706_p7, %p700_p5 }
  0x60   : > { %710 = shalt.err (!%p707_p0)
}
  0x61   : > { %559 = dma.hbm_to_vmem [thread:$0]  (!%p982_p9), %s1082_s1, 1024, %s137_s10, [#allocation6], %s788_s20, %s788_s20, %s789_s21  }
  0x62   : > { %p1097_p3 = scmp.ne.s32.totalorder %s1093_s8, 0 }
  0x63   : > { %s196_s9 = sand.u32 (!%p1097_p3), 1, %s906_s27   ;;  %s1009_s23 = sand.u32 (!%p1097_p3), 1, %s777_s13  }
  0x64   : > { %194 = sbr.rel (%p1097_p3) target bundleno = 378 (0x17a), region = 32  ;;  %s492_s17 = sshll.u32 (!%p1097_p3), %s1009_s23, 3 }
  0x65   : > { %s197_s29 = scalar_lea.sflag (!%p1097_p3), [#allocation3], %s196_s9  ;;  %s1012_s11 = scalar_lea.vmem (!%p1097_p3), [#allocation2], %s492_s17 }
  0x66   : > { %p1098_p0 = scmp.ne.s32.totalorder (!%p1097_p3), %s1090_s5, 0 }
  0x6b   : > { %756 = dma.done.wait (%p1098_p0), %s197_s29, 128  }
  0x6c   : > { %758 = vsyncadd (%p1098_p0), %s197_s29, 4294967168  ;;  %p1099_p9 = scmp.eq.s32.totalorder %s906_s27, 0 }
  0x6e   : > { %760 = dma.done.wait (%p1099_p9), [#allocation6], 1024   ;;  %p1100_p12 = pmov %p1099_p9 }
  0x6f   : > { %s1022_s20 = scalar_lea.vmem [#allocation7], %s492_s17 }
  0x70   : > { %762 = vsyncadd (%p1100_p12), [#allocation6], 4294966272 }
  0x71   : > { %764 = dma.done.wait (%p1098_p0), %s197_s29, 128  }
  0x72   : > { %766 = vsyncadd (%p1098_p0), %s197_s29, 4294967168  ;;  %v792_v0 = vmov 0.0   ;;  %vm793_vm0 = vmmov 0   ;;  %v614_v1 = vld [vmem:[#allocation5] sm:$0xff]   ;;  %v615_v2 = vld [vmem:[#allocation5 + $0x8] sm:$0xff]   ;;  %s495_s21 = sshll.u32 %s1009_s23, 4 }
  0x73   : > { %526 = vmatprep.subr.bf16.mxu0 %v792_v0  ;;  %542 = vmatprep.mubr.msk.bf16.mxu0 %vm793_vm0, %v792_v0  ;;  %v616_v3 = vld [vmem:[#allocation5 + $0x10] sm:$0xff]   ;;  %v617_v4 = vld [vmem:[#allocation5 + $0x18] sm:$0xff]   ;;  %v618_v5 = vld [vmem:[#allocation5 + $0x20] sm:$0xff]   ;;  %s240_s5 = scalar_lea.vmem [#allocation8], %s495_s21  ;;  %s512_s10 = sshll.u32 %s906_s27, 8 }
  0x74   : > { %527 = vmatpush3.bf16.msra.mxu0 %v614_v1  ;;  %v619_v6 = vld [vmem:[#allocation5 + $0x28] sm:$0xff]   ;;  %v620_v7 = vld [vmem:[#allocation5 + $0x30] sm:$0xff]   ;;  %v621_v8 = vld [vmem:[#allocation5 + $0x38] sm:$0xff]   ;;  %s378_s8 = sshll.u32 %s240_s5, 4  ;;  %s1037_s4 = scalar_lea.hbm %s1084_s3, %s512_s10  ;;  %s1032_s8 = int_to_ptr.vmem [resolvable:$true] %s378_s8 }
  0x75   : > { %528 = vmatprep.subr.bf16.mxu0 %v792_v0  ;;  %v622_v9 = vld [vmem:[%s1012_s11] sm:$0xff]   ;;  %v514_v10 = vld [vmem:[%s1022_s20] sm:$0xff]   ;;  %s365_s30 = scalar_lea.sflag [#allocation4], %s1009_s23  ;;  %s711_s27 = scalar_lea.vmem %s1032_s8, 256 }
  0x76   : > { %v515_v11 = vunpack.c.l.bf16 %v514_v10  ;;  %v516_v12 = vunpack.c.h.bf16 %v514_v10  ;;  %p712_p6 = scmp.ne.s32.totalorder %s1032_s8, %s711_s27  ;;  %p1101_p1 = scmp.ne.s32.totalorder %s1091_s22, 0 }
  0x77   : > { %s794_s25 = smov [#allocation8]  }
  0x78   : > { %529 = vmatpush3.bf16.msra.mxu0 %v615_v2  ;;  %p713_p11 = pnand %p712_p6, %p1101_p1  ;;  %s715_s7 = sshll.u32 %s794_s25, 4  ;;  %s716_s7 = int_to_ptr.vmem [resolvable:$false] %s715_s7 }
  0x79   : > { %530 = vmatprep.subr.bf16.mxu0 %v792_v0  ;;  %s717_s28 = scalar_lea.vmem %s716_s7, 512  ;;  %p718_p4 = scmp.lt.s32.totalorder %s1032_s8, %s716_s7 }
  0x7a   : > { %p714_p13 = pneg %p713_p11  ;;  %p719_p2 = scmp.lt.s32.totalorder %s717_s28, %s711_s27 }
  0x7c   : > { %531 = vmatpush3.bf16.msra.mxu0 %v616_v3  ;;  %p720_p5 = por %p719_p2, %p718_p4 }
  0x7d   : > { %532 = vmatprep.subr.bf16.mxu0 %v792_v0 }
  0x7e   : > { %p721_p10 = pnand %p720_p5, %p714_p13 }
  0x80   : > { %533 = vmatpush3.bf16.msra.mxu0 %v617_v4 }
  0x81   : > { %534 = vmatprep.subr.bf16.mxu0 %v792_v0 }
  0x84   : > { %535 = vmatpush3.bf16.msra.mxu0 %v618_v5 }
  0x85   : > { %536 = vmatprep.subr.bf16.mxu0 %v792_v0 }
  0x88   : > { %537 = vmatpush3.bf16.msra.mxu0 %v619_v6 }
  0x89   : > { %538 = vmatprep.subr.bf16.mxu0 %v792_v0 }
  0x8c   : > { %539 = vmatpush3.bf16.msra.mxu0 %v620_v7 }
  0x8d   : > { %540 = vmatprep.subr.bf16.mxu0 %v792_v0 }
  0x90   : > { %541 = vmatpush3.bf16.msra.mxu0 %v621_v8 }
  0x93   : > { %543 = vmatmul.mubr.bf16.vlgmr.msra.gmra.mrb[0].mxu0 %v622_v9 }
 0x166   : > { %v355_v13 = vpop.f32.mrb[0].mxu0 }
 0x167   : > { %v356_v14 = vadd.f32 %v515_v11, %v355_v13  ;;  %v544_v15 = vpop.f32.mrb[1].mxu0 }
 0x168   : > { %v358_v16 = vpop.f32.mrb[2].mxu0 }
 0x169   : > { %362 = vst [vmem:[%s240_s5] sm:$0xff] %v356_v14  ;;  %v359_v17 = vadd.f32 %v516_v12, %v358_v16  ;;  %v545_v18 = vpop.f32.mrb[3].mxu0 }
 0x16b   : > { %363 = vst [vmem:[%s240_s5 + $0x8] sm:$0xff] %v359_v17 }
 0x16c   : > { %724 = shalt.err (!%p721_p10)
}
 0x16d   : > { %s725_s6 = scalar_lea.hbm %s1037_s4, 256  ;;  %s729_s29 = scalar_lea.hbm %s1084_s3, 512 }
 0x16e   : > { %p726_p8 = scmp.ne.s32.totalorder %s1037_s4, %s725_s6  ;;  %p730_p0 = scmp.lt.u32.totalorder %s1037_s4, %s1084_s3 }
 0x16f   : > { %p731_p9 = scmp.lt.u32.totalorder %s729_s29, %s725_s6  ;;  %p733_p6 = scmp.lt.u32.totalorder %s725_s6, %s1037_s4 }
 0x170   : > { %p727_p7 = pnand %p726_p8, %p1101_p1 }
 0x171   : > { %p732_p12 = por %p731_p9, %p730_p0 }
 0x172   : > { %p728_p3 = pneg %p727_p7 }
 0x173   : > { %p734_p11 = por %p733_p6, %p732_p12 }
 0x175   : > { %p735_p13 = pnand %p734_p11, %p728_p3 }
 0x177   : > { %738 = shalt.err (!%p735_p13)
}
 0x178   : > { %s795_s21 = smov 128   ;;  %s796_s5 = smov 8  }
 0x179   : > { %554 = dma.vmem_to_hbm [thread:$0]  (%p1101_p1), %s1032_s8, 256, %s1037_s4, %s365_s30, %s795_s21, %s795_s21, %s796_s5  }
 0x17a PF: > { %s393_s10 = sand.u32 1, %s773_s12   ;;  %p1102_p4 = scmp.ne.s32.totalorder %s1092_s26, 0 }
 0x17b   : > { %p1103_p2 = scmp.ge.s32.totalorder %s785_s15, 2  ;;  %s394_s18 = scalar_lea.sflag [#allocation4], %s393_s10 }
 0x17d   : > { %p568_p5 = pnand %p1103_p2, %p1102_p4 }
 0x17f   : > { %768 = dma.done.wait (!%p568_p5), %s394_s18, 256  }
 0x180   : > { %770 = vsyncadd (!%p568_p5), %s394_s18, 4294967040  ;;  %p17_p10 = scmp.ge.s32.totalorder %s838_s16, 4   ;;  %s1104_s12 = smov %s777_s13 }
 0x181   : > { %s1105_s13 = smov %s781_s14  ;;  %s1106_s14 = smov %s847_s19 }
 0x182   : > { %s1107_s15 = smov %s838_s16  ;;  %19 = sbr.rel (!%p17_p10) target bundleno = 6 (0x6), region = 92 }
 0x189   :  { %399 = vsyncpa [#allocation3], 1 }
 0x18a   :  { %401 = vsyncpa [#allocation3 + $0x1], 1 }
 0x18b   :  { %402 = vsyncpa [#allocation6], 1 }
 0x18c   :  { %403 = vsyncpa [#allocation4], 1 }
 0x18d   :  { %405 = vsyncpa [#allocation4 + $0x1], 1 }

// kernel: tpu_custom_call.1
= control target key start
LH: loop header
LB: loop body
LE: loop exit
PB: predicated region body
PF: predicated region fallthrough
CT: control target
= control target key end

     0   :  { %8 = vsyncpa [#allocation3], 0  ;;  %s1081_s0 = inlined_call_operand.hbm [shape: bf16[32,128], index: 0, kind: input, shape index: {}]   ;;  %s1082_s1 = inlined_call_operand.hbm [shape: bf16[128,128], index: 1, kind: input, shape index: {}]   ;;  %s1083_s2 = inlined_call_operand.hbm [shape: bf16[32,128], index: 2, kind: input, shape index: {}]   ;;  %s1084_s3 = inlined_call_operand.hbm [shape: f32[32,128], index: 3, kind: output, shape index: {}]  }
   0x1   :  { %10 = vsyncpa [#allocation3 + $0x1], 0 }
   0x2   :  { %11 = vsyncpa [#allocation6], 0 }
   0x3   :  { %12 = vsyncpa [#allocation4], 0 }
   0x4   :  { %14 = vsyncpa [#allocation4 + $0x1], 0  ;;  %s817_s12 = smov 0   ;;  %s819_s13 = smov 0  }
   0x5   :  { %s821_s14 = smov 0   ;;  %s823_s15 = smov 0  }
   0x6 LB: > { %s838_s16 = sadd.s32 1, %s785_s15   ;;  %s27_s17 = sadd.s32 1, %s781_s14  ;;  %s785_s15 = sphi %s823_s15, %s1107_s15   ;;  %s781_s14 = sphi %s821_s14, %s1106_s14   ;;  %s777_s13 = sphi %s819_s13, %s1105_s13   ;;  %s773_s12 = sphi %s817_s12, %s1104_s12  }
   0x7   : > { %s24_s18 = ssub.s32 %s785_s15, %s838_s16  ;;  %p34_p0 = scmp.ne.s32.totalorder %s781_s14, %s777_s13 }
   0x8   : > { %p25_p1 = scmp.eq.s32.totalorder %s24_s18, 0  ;;  %p35_p2 = scmp.eq.s32.totalorder %s785_s15, 0 }
   0x9   : > { %p572_p5 = scmp.lt.s32.totalorder %s785_s15, 2  ;;  %s150_s20 = sand.u32 1, %s785_s15  }
   0xa   : > { %s847_s19 = scalar_select %p25_p1, %s781_s14, %s27_s17  }
   0xb   : > { %p36_p3 = por %p35_p2, %p34_p0  ;;  %s152_s21 = sand.u32 1, %s781_s14  }
   0xc   : > { %s856_s22 = sshll.u32 %s152_s21, 3  ;;  %s510_s23 = sshll.u32 %s785_s15, 7 }
   0xd   : > { %s864_s26 = scalar_lea.hbm %s1081_s0, %s510_s23  ;;  %s154_s27 = scalar_lea.vmem [#allocation2], %s856_s22 }
   0xe   : > { %s161_s28 = sshll.u32 %s154_s27, 4  ;;  %p867_p6 = pnand %p572_p5, %p36_p3  ;;  %s871_s28 = int_to_ptr.vmem [resolvable:$true] %s161_s28 }
   0xf   : > { %s873_s30 = scalar_lea.sflag [#allocation3], %s150_s20  ;;  %s623_s4 = scalar_lea.hbm %s864_s26, 128 }
  0x10   : > { %p624_p7 = scmp.ne.s32.totalorder %s864_s26, %s623_s4  ;;  %p625_p8 = pneg %p867_p6 }
  0x11   : > { %s628_s7 = scalar_lea.hbm %s1081_s0, 256  ;;  %p629_p11 = scmp.lt.u32.totalorder %s864_s26, %s1081_s0 }
  0x12   : > { %p626_p9 = pnand %p625_p8, %p624_p7  ;;  %p630_p12 = scmp.lt.u32.totalorder %s628_s7, %s623_s4 }
  0x13   : > { %p632_p1 = scmp.lt.u32.totalorder %s623_s4, %s864_s26 }
  0x14   : > { %p627_p10 = pneg %p626_p9  ;;  %p631_p13 = por %p630_p12, %p629_p11 }
  0x16   : > { %p633_p2 = por %p632_p1, %p631_p13 }
  0x18   : > { %p634_p3 = pnand %p633_p2, %p627_p10 }
  0x1a   : > { %637 = shalt.err (!%p634_p3)
}
  0x1b   : > { %s638_s10 = scalar_lea.vmem %s871_s28, 128  ;;  %s787_s11 = smov [#allocation2]  }
  0x1c   : > { %p639_p5 = scmp.ne.s32.totalorder %s871_s28, %s638_s10  ;;  %s643_s17 = sshll.u32 %s787_s11, 4  ;;  %s644_s17 = int_to_ptr.vmem [resolvable:$false] %s643_s17 }
  0x1d   : > { %s645_s18 = scalar_lea.vmem %s644_s17, 256  ;;  %p646_p4 = scmp.lt.s32.totalorder %s871_s28, %s644_s17 }
  0x1e   : > { %p641_p7 = pnand %p639_p5, %p625_p8  ;;  %p647_p11 = scmp.lt.s32.totalorder %s645_s18, %s638_s10 }
  0x20   : > { %p642_p9 = pneg %p641_p7  ;;  %p648_p12 = por %p647_p11, %p646_p4 }
  0x22   : > { %p649_p13 = pnand %p648_p12, %p642_p9 }
  0x24   : > { %652 = shalt.err (!%p649_p13)
}
  0x25   : > { %s788_s20 = smov 64   ;;  %s789_s21 = smov 4  }
  0x26   : > { %563 = dma.hbm_to_vmem [thread:$0]  (!%p867_p6), %s864_s26, 128, %s871_s28, %s873_s30, %s788_s20, %s788_s20, %s789_s21  }
  0x27   : > { %s175_s24 = scalar_lea.vmem [#allocation7], %s856_s22  ;;  %s906_s27 = sadd.s32 4294967295, %s785_s15  }
  0x28   : > { %s182_s25 = sshll.u32 %s175_s24, 4  ;;  %s481_s4 = sadd.s32 4294967294, %s785_s15   ;;  %s939_s25 = int_to_ptr.vmem [resolvable:$true] %s182_s25 }
  0x29   : > { %p40_p4 = scmp.ne.s32.totalorder %s777_s13, %s773_s12  ;;  %p1085_p10 = scmp.eq.s32.totalorder %s906_s27, 0 }
  0x2a   : > { %p111_p1 = scmp.eq.s32.totalorder %s906_s27, 1  ;;  %p117_p2 = scmp.eq.s32.totalorder %s481_s4, 1 }
  0x2b   : > { %p915_p3 = por %p1085_p10, %p40_p4  ;;  %p482_p5 = scmp.ge.s32.totalorder %s785_s15, 1 }
  0x2c   : > { %p923_p7 = por %p111_p1, %p34_p0  ;;  %p927_p9 = por %p117_p2, %p40_p4 }
  0x2d   : > { %s1090_s5 = scalar_select %p915_p3, 1, 0 }
  0x2e   : > { %s1091_s22 = scalar_select %p923_p7, 1, 0 }
  0x2f   : > { %s1092_s26 = scalar_select %p927_p9, 1, 0 }
  0x30   : > { %p124_p11 = scmp.lt.s32.totalorder %s785_s15, 3  ;;  %s937_s7 = scalar_lea.hbm %s1083_s2, %s510_s23 }
  0x31   : > { %s790_s9 = smov [#allocation5]   ;;  %s653_s11 = scalar_lea.hbm %s937_s7, 128 }
  0x32   : > { %p941_p0 = pnand %p482_p5, %p124_p11  ;;  %s945_s10 = sshll.u32 %s790_s9, 4  ;;  %s137_s10 = int_to_ptr.vmem [resolvable:$true] %s945_s10 }
  0x33   : > { %p654_p13 = scmp.ne.s32.totalorder %s937_s7, %s653_s11  ;;  %s658_s18 = scalar_lea.hbm %s1083_s2, 256 }
  0x34   : > { %s1093_s8 = scalar_select %p941_p0, 1, 0 }
  0x35   : > { %p656_p4 = pnand %p654_p13, %p625_p8  ;;  %p659_p2 = scmp.lt.u32.totalorder %s937_s7, %s1083_s2 }
  0x36   : > { %p660_p5 = scmp.lt.u32.totalorder %s658_s18, %s653_s11  ;;  %p662_p10 = scmp.lt.u32.totalorder %s653_s11, %s937_s7 }
  0x37   : > { %p657_p1 = pneg %p656_p4 }
  0x38   : > { %p661_p11 = por %p660_p5, %p659_p2 }
  0x3a   : > { %p663_p9 = por %p662_p10, %p661_p11 }
  0x3c   : > { %p664_p7 = pnand %p663_p9, %p657_p1 }
  0x3e   : > { %667 = shalt.err (!%p664_p7)
}
  0x3f   : > { %s668_s28 = scalar_lea.vmem %s939_s25, 128  ;;  %s791_s6 = smov [#allocation7]  }
  0x40   : > { %p669_p13 = scmp.ne.s32.totalorder %s939_s25, %s668_s28  ;;  %s673_s9 = sshll.u32 %s791_s6, 4  ;;  %s674_s9 = int_to_ptr.vmem [resolvable:$false] %s673_s9 }
  0x41   : > { %s675_s23 = scalar_lea.vmem %s674_s9, 256  ;;  %p676_p3 = scmp.lt.s32.totalorder %s939_s25, %s674_s9 }
  0x42   : > { %p671_p4 = pnand %p669_p13, %p625_p8  ;;  %p677_p2 = scmp.lt.s32.totalorder %s675_s23, %s668_s28 }
  0x44   : > { %p672_p12 = pneg %p671_p4  ;;  %p678_p5 = por %p677_p2, %p676_p3 }
  0x46   : > { %p679_p10 = pnand %p678_p5, %p672_p12 }
  0x48   : > { %682 = shalt.err (!%p679_p10)
}
  0x49   : > { %566 = dma.hbm_to_vmem [thread:$0]  (!%p867_p6), %s937_s7, 128, %s939_s25, %s873_s30, %s788_s20, %s788_s20, %s789_s21  }
  0x4a   : > { %p1094_p8 = scmp.eq.s32.totalorder %s906_s27, 0  ;;  %p1095_p7 = pneg %p941_p0 }
  0x4b   : > { %s683_s18 = scalar_lea.hbm %s1082_s1, 1024 }
  0x4c   : > { %p982_p9 = pnand %p1095_p7, %p1094_p8  ;;  %p684_p3 = scmp.ne.s32.totalorder %s1082_s1, %s683_s18 }
  0x4d   : > { %p690_p11 = scmp.lt.u32.totalorder %s683_s18, %s1082_s1 }
  0x4e   : > { %p685_p12 = pneg %p982_p9 }
  0x50   : > { %p686_p6 = pnand %p685_p12, %p684_p3 }
  0x52   : > { %p687_p1 = pneg %p686_p6 }
  0x54   : > { %p692_p13 = pnand %p690_p11, %p687_p1 }
  0x56   : > { %695 = shalt.err (!%p692_p13)
}
  0x57   : > { %s696_s7 = scalar_lea.vmem %s137_s10, 1024  ;;  %p704_p10 = scmp.lt.s32.totalorder %s137_s10, %s137_s10 }
  0x58   : > { %p697_p4 = scmp.ne.s32.totalorder %s137_s10, %s696_s7  ;;  %p705_p8 = scmp.lt.s32.totalorder %s696_s7, %s696_s7 }
  0x5a   : > { %p699_p2 = pnand %p697_p4, %p685_p12  ;;  %p706_p7 = por %p705_p8, %p704_p10 }
  0x5c   : > { %p700_p5 = pneg %p699_p2 }
  0x5e   : > { %p707_p0 = pnand %p706_p7, %p700_p5 }
  0x60   : > { %710 = shalt.err (!%p707_p0)
}
  0x61   : > { %559 = dma.hbm_to_vmem [thread:$0]  (!%p982_p9), %s1082_s1, 1024, %s137_s10, [#allocation6], %s788_s20, %s788_s20, %s789_s21  }
  0x62   : > { %p1097_p3 = scmp.ne.s32.totalorder %s1093_s8, 0 }
  0x63   : > { %s196_s9 = sand.u32 (!%p1097_p3), 1, %s906_s27   ;;  %s1009_s23 = sand.u32 (!%p1097_p3), 1, %s777_s13  }
  0x64   : > { %194 = sbr.rel (%p1097_p3) target bundleno = 378 (0x17a), region = 32  ;;  %s492_s17 = sshll.u32 (!%p1097_p3), %s1009_s23, 3 }
  0x65   : > { %s197_s29 = scalar_lea.sflag (!%p1097_p3), [#allocation3], %s196_s9  ;;  %s1012_s11 = scalar_lea.vmem (!%p1097_p3), [#allocation2], %s492_s17 }
  0x66   : > { %p1098_p0 = scmp.ne.s32.totalorder (!%p1097_p3), %s1090_s5, 0 }
  0x6b   : > { %756 = dma.done.wait (%p1098_p0), %s197_s29, 128  }
  0x6c   : > { %758 = vsyncadd (%p1098_p0), %s197_s29, 4294967168  ;;  %p1099_p9 = scmp.eq.s32.totalorder %s906_s27, 0 }
  0x6e   : > { %760 = dma.done.wait (%p1099_p9), [#allocation6], 1024   ;;  %p1100_p12 = pmov %p1099_p9 }
  0x6f   : > { %s1022_s20 = scalar_lea.vmem [#allocation7], %s492_s17 }
  0x70   : > { %762 = vsyncadd (%p1100_p12), [#allocation6], 4294966272 }
  0x71   : > { %764 = dma.done.wait (%p1098_p0), %s197_s29, 128  }
  0x72   : > { %766 = vsyncadd (%p1098_p0), %s197_s29, 4294967168  ;;  %v792_v0 = vmov 0.0   ;;  %vm793_vm0 = vmmov 0   ;;  %v614_v1 = vld [vmem:[#allocation5] sm:$0xff]   ;;  %v615_v2 = vld [vmem:[#allocation5 + $0x8] sm:$0xff]   ;;  %s495_s21 = sshll.u32 %s1009_s23, 4 }
  0x73   : > { %526 = vmatprep.subr.bf16.mxu0 %v792_v0  ;;  %542 = vmatprep.mubr.msk.bf16.mxu0 %vm793_vm0, %v792_v0  ;;  %v616_v3 = vld [vmem:[#allocation5 + $0x10] sm:$0xff]   ;;  %v617_v4 = vld [vmem:[#allocation5 + $0x18] sm:$0xff]   ;;  %v618_v5 = vld [vmem:[#allocation5 + $0x20] sm:$0xff]   ;;  %s240_s5 = scalar_lea.vmem [#allocation8], %s495_s21  ;;  %s512_s10 = sshll.u32 %s906_s27, 8 }
  0x74   : > { %527 = vmatpush3.bf16.msra.mxu0 %v614_v1  ;;  %v619_v6 = vld [vmem:[#allocation5 + $0x28] sm:$0xff]   ;;  %v620_v7 = vld [vmem:[#allocation5 + $0x30] sm:$0xff]   ;;  %v621_v8 = vld [vmem:[#allocation5 + $0x38] sm:$0xff]   ;;  %s378_s8 = sshll.u32 %s240_s5, 4  ;;  %s1037_s4 = scalar_lea.hbm %s1084_s3, %s512_s10  ;;  %s1032_s8 = int_to_ptr.vmem [resolvable:$true] %s378_s8 }
  0x75   : > { %528 = vmatprep.subr.bf16.mxu0 %v792_v0  ;;  %v622_v9 = vld [vmem:[%s1012_s11] sm:$0xff]   ;;  %v514_v10 = vld [vmem:[%s1022_s20] sm:$0xff]   ;;  %s365_s30 = scalar_lea.sflag [#allocation4], %s1009_s23  ;;  %s711_s27 = scalar_lea.vmem %s1032_s8, 256 }
  0x76   : > { %v515_v11 = vunpack.c.l.bf16 %v514_v10  ;;  %v516_v12 = vunpack.c.h.bf16 %v514_v10  ;;  %p712_p6 = scmp.ne.s32.totalorder %s1032_s8, %s711_s27  ;;  %p1101_p1 = scmp.ne.s32.totalorder %s1091_s22, 0 }
  0x77   : > { %s794_s25 = smov [#allocation8]  }
  0x78   : > { %529 = vmatpush3.bf16.msra.mxu0 %v615_v2  ;;  %p713_p11 = pnand %p712_p6, %p1101_p1  ;;  %s715_s7 = sshll.u32 %s794_s25, 4  ;;  %s716_s7 = int_to_ptr.vmem [resolvable:$false] %s715_s7 }
  0x79   : > { %530 = vmatprep.subr.bf16.mxu0 %v792_v0  ;;  %s717_s28 = scalar_lea.vmem %s716_s7, 512  ;;  %p718_p4 = scmp.lt.s32.totalorder %s1032_s8, %s716_s7 }
  0x7a   : > { %p714_p13 = pneg %p713_p11  ;;  %p719_p2 = scmp.lt.s32.totalorder %s717_s28, %s711_s27 }
  0x7c   : > { %531 = vmatpush3.bf16.msra.mxu0 %v616_v3  ;;  %p720_p5 = por %p719_p2, %p718_p4 }
  0x7d   : > { %532 = vmatprep.subr.bf16.mxu0 %v792_v0 }
  0x7e   : > { %p721_p10 = pnand %p720_p5, %p714_p13 }
  0x80   : > { %533 = vmatpush3.bf16.msra.mxu0 %v617_v4 }
  0x81   : > { %534 = vmatprep.subr.bf16.mxu0 %v792_v0 }
  0x84   : > { %535 = vmatpush3.bf16.msra.mxu0 %v618_v5 }
  0x85   : > { %536 = vmatprep.subr.bf16.mxu0 %v792_v0 }
  0x88   : > { %537 = vmatpush3.bf16.msra.mxu0 %v619_v6 }
  0x89   : > { %538 = vmatprep.subr.bf16.mxu0 %v792_v0 }
  0x8c   : > { %539 = vmatpush3.bf16.msra.mxu0 %v620_v7 }
  0x8d   : > { %540 = vmatprep.subr.bf16.mxu0 %v792_v0 }
  0x90   : > { %541 = vmatpush3.bf16.msra.mxu0 %v621_v8 }
  0x93   : > { %543 = vmatmul.mubr.bf16.vlgmr.msra.gmra.mrb[0].mxu0 %v622_v9 }
 0x166   : > { %v355_v13 = vpop.f32.mrb[0].mxu0 }
 0x167   : > { %v356_v14 = vadd.f32 %v515_v11, %v355_v13  ;;  %v544_v15 = vpop.f32.mrb[1].mxu0 }
 0x168   : > { %v358_v16 = vpop.f32.mrb[2].mxu0 }
 0x169   : > { %362 = vst [vmem:[%s240_s5] sm:$0xff] %v356_v14  ;;  %v359_v17 = vadd.f32 %v516_v12, %v358_v16  ;;  %v545_v18 = vpop.f32.mrb[3].mxu0 }
 0x16b   : > { %363 = vst [vmem:[%s240_s5 + $0x8] sm:$0xff] %v359_v17 }
 0x16c   : > { %724 = shalt.err (!%p721_p10)
}
 0x16d   : > { %s725_s6 = scalar_lea.hbm %s1037_s4, 256  ;;  %s729_s29 = scalar_lea.hbm %s1084_s3, 512 }
 0x16e   : > { %p726_p8 = scmp.ne.s32.totalorder %s1037_s4, %s725_s6  ;;  %p730_p0 = scmp.lt.u32.totalorder %s1037_s4, %s1084_s3 }
 0x16f   : > { %p731_p9 = scmp.lt.u32.totalorder %s729_s29, %s725_s6  ;;  %p733_p6 = scmp.lt.u32.totalorder %s725_s6, %s1037_s4 }
 0x170   : > { %p727_p7 = pnand %p726_p8, %p1101_p1 }
 0x171   : > { %p732_p12 = por %p731_p9, %p730_p0 }
 0x172   : > { %p728_p3 = pneg %p727_p7 }
 0x173   : > { %p734_p11 = por %p733_p6, %p732_p12 }
 0x175   : > { %p735_p13 = pnand %p734_p11, %p728_p3 }
 0x177   : > { %738 = shalt.err (!%p735_p13)
}
 0x178   : > { %s795_s21 = smov 128   ;;  %s796_s5 = smov 8  }
 0x179   : > { %554 = dma.vmem_to_hbm [thread:$0]  (%p1101_p1), %s1032_s8, 256, %s1037_s4, %s365_s30, %s795_s21, %s795_s21, %s796_s5  }
 0x17a PF: > { %s393_s10 = sand.u32 1, %s773_s12   ;;  %p1102_p4 = scmp.ne.s32.totalorder %s1092_s26, 0 }
 0x17b   : > { %p1103_p2 = scmp.ge.s32.totalorder %s785_s15, 2  ;;  %s394_s18 = scalar_lea.sflag [#allocation4], %s393_s10 }
 0x17d   : > { %p568_p5 = pnand %p1103_p2, %p1102_p4 }
 0x17f   : > { %768 = dma.done.wait (!%p568_p5), %s394_s18, 256  }
 0x180   : > { %770 = vsyncadd (!%p568_p5), %s394_s18, 4294967040  ;;  %p17_p10 = scmp.ge.s32.totalorder %s838_s16, 4   ;;  %s1104_s12 = smov %s777_s13 }
 0x181   : > { %s1105_s13 = smov %s781_s14  ;;  %s1106_s14 = smov %s847_s19 }
 0x182   : > { %s1107_s15 = smov %s838_s16  ;;  %19 = sbr.rel (!%p17_p10) target bundleno = 6 (0x6), region = 92 }
 0x189   :  { %399 = vsyncpa [#allocation3], 1 }
 0x18a   :  { %401 = vsyncpa [#allocation3 + $0x1], 1 }
 0x18b   :  { %402 = vsyncpa [#allocation6], 1 }
 0x18c   :  { %403 = vsyncpa [#allocation4], 1 }
 0x18d   :  { %405 = vsyncpa [#allocation4 + $0x1], 1 }

</bundles_post_ra>
